<compile_context>
chip_gen: v7x
topology: tpu7x:2x2x1
jax: 0.10.0
libtpu: 0.0.40
codegen_flags: <defaults>
</compile_context>

<pallas_src>
import jax
import jax.numpy as jnp
from jax.experimental import pallas as pl
from jax.experimental.pallas import tpu as pltpu


# ----------------------------- kernel body ----------------------------------


def _mlp_kernel(x_ref, w1_ref, b1_ref, w2_ref, b2_ref, w3_ref, b3_ref, o_ref):
    # x_ref: (TM, D_in) compute-dtype tile; weights pre-transposed to [in, out].
    x = x_ref[...]

    # fc1 + sigmoid (accumulate f32, epilogue in f32)
    h1 = jnp.dot(x, w1_ref[...], preferred_element_type=jnp.float32) + b1_ref[...]
    h1 = jax.nn.sigmoid(h1).astype(w2_ref.dtype)

    # fc2 + sigmoid
    h2 = jnp.dot(h1, w2_ref[...], preferred_element_type=jnp.float32) + b2_ref[...]
    h2 = jax.nn.sigmoid(h2).astype(w3_ref.dtype)

    # fc3 (no activation)
    y = jnp.dot(h2, w3_ref[...], preferred_element_type=jnp.float32) + b3_ref[...]
    o_ref[...] = y.astype(o_ref.dtype)


# ----------------------------- helpers ---------------------------------------


def _round_up(v, m):
    return ((v + m - 1) // m) * m


def _pad2(a, rows, cols):
    return jnp.pad(a, ((0, rows - a.shape[0]), (0, cols - a.shape[1])))


def _vmem_limit_bytes(tm, d_in, h, d_out, compute_dtype):
    bpe = jnp.dtype(compute_dtype).itemsize
    weights = (d_in * h + h * h + h * d_out) * bpe          # resident weights
    biases = (2 * h + d_out) * 4                            # f32 biases
    io_tiles = 2 * (tm * d_in * bpe + tm * d_out * 4)       # double-buffered x / out
    live = 2 * tm * h * 4                                   # h1 / h2 f32 intermediates
    needed = 2 * weights + 2 * biases + io_tiles + live
    # Generous headroom, but stay safely under v7x's 64 MiB physical VMEM per TC.
    return int(min(max(4 * needed, 16 * 2**20), 48 * 2**20))


def _forward_padded(x_p, w1, b1, w2, b2, w3, b3, *, tm, vmem_limit, weight_mode):
    b_pad, d_in = x_p.shape
    h = w1.shape[1]
    d_out = w3.shape[1]

    def wspec(shape):
        # Constant index_map: weights/biases stay resident in VMEM across steps.
        if weight_mode is None:
            return pl.BlockSpec(shape, lambda i: (0, 0))
        return pl.BlockSpec(shape, lambda i: (0, 0), pipeline_mode=weight_mode)

    return pl.pallas_call(
        _mlp_kernel,
        out_shape=jax.ShapeDtypeStruct((b_pad, d_out), jnp.float32),
        grid=(b_pad // tm,),
        in_specs=[
            pl.BlockSpec((tm, d_in), lambda i: (i, 0)),      # x: tiled over batch
            wspec((d_in, h)), wspec((1, h)),                 # fc1
            wspec((h, h)), wspec((1, h)),                    # fc2
            wspec((h, d_out)), wspec((1, d_out)),            # fc3
        ],
        out_specs=pl.BlockSpec((tm, d_out), lambda i: (i, 0)),
        compiler_params=pltpu.CompilerParams(
            dimension_semantics=("parallel",),               # megacore on v7x
            vmem_limit_bytes=vmem_limit,
        ),
    )(x_p, w1, b1, w2, b2, w3, b3)


# ----------------------------- public wrapper ---------------------------------


def fully_connected_nn(x, params, *, tm=256, compute_dtype=jnp.bfloat16):
    """Forward pass of FullyConnectedNN via a batch-tiled Pallas kernel.

    x: [batch, input_dim] float32
    params: dict with w1 [in,h], b1 [1,h], w2 [h,h], b2 [1,h], w3 [h,out], b3 [1,out]
    tm: batch tile (multiple of 8). 256 fits comfortably on v5e/v6e (128 MiB VMEM)
        and v7x (64 MiB) for these layer sizes.
    """
    batch, input_dim = x.shape
    hidden_dim = params["w1"].shape[1]
    output_dim = params["w3"].shape[1]

    # Lane-align every feature dim (zero padding is numerically exact here).
    d_in_p = _round_up(input_dim, 128)
    h_p = _round_up(hidden_dim, 128)
    d_out_p = _round_up(output_dim, 128)

    # Batch tiling (don't over-tile tiny batches); pad batch to a tile multiple.
    tm = max(8, min(tm, _round_up(batch, 8)))
    b_pad = _round_up(batch, tm)

    x_p = _pad2(x, b_pad, d_in_p).astype(compute_dtype)
    w1 = _pad2(params["w1"], d_in_p, h_p).astype(compute_dtype)
    w2 = _pad2(params["w2"], h_p, h_p).astype(compute_dtype)
    w3 = _pad2(params["w3"], h_p, d_out_p).astype(compute_dtype)
    b1 = _pad2(params["b1"], 1, h_p).astype(jnp.float32)
    b2 = _pad2(params["b2"], 1, h_p).astype(jnp.float32)
    b3 = _pad2(params["b3"], 1, d_out_p).astype(jnp.float32)

    vmem_limit = _vmem_limit_bytes(tm, d_in_p, h_p, d_out_p, compute_dtype)

    try:
        # Preferred: single-buffered resident weights (halves weight VMEM).
        y = _forward_padded(
            x_p, w1, b1, w2, b2, w3, b3,
            tm=tm, vmem_limit=vmem_limit, weight_mode=pl.Buffered(1))
        y = jax.block_until_ready(y)
    except Exception:
        # Fallback if this JAX build rejects Buffered(1) for pallas_call specs.
        y = _forward_padded(
            x_p, w1, b1, w2, b2, w3, b3,
            tm=tm, vmem_limit=vmem_limit, weight_mode=None)
        y = jax.block_until_ready(y)

    return y[:batch, :output_dim].astype(x.dtype)


# ----------------------------- init / reference -------------------------------


def init_params(key, input_dim, hidden_dim, output_dim, dtype=jnp.float32):
    """Mimics nn.Linear's U(-1/sqrt(fan_in), 1/sqrt(fan_in)); weights stored [in, out]."""
    keys = jax.random.split(key, 6)

    def linear(kw, kb, fan_in, fan_out):
        bound = 1.0 / jnp.sqrt(jnp.float32(fan_in))
        w = jax.random.uniform(kw, (fan_in, fan_out), dtype, -bound, bound)
        b = jax.random.uniform(kb, (1, fan_out), dtype, -bound, bound)
        return w, b

    w1, b1 = linear(keys[0], keys[1], input_dim, hidden_dim)
    w2, b2 = linear(keys[2], keys[3], hidden_dim, hidden_dim)
    w3, b3 = linear(keys[4], keys[5], hidden_dim, output_dim)
    return {"w1": w1, "b1": b1, "w2": w2, "b2": b2, "w3": w3, "b3": b3}


def reference_forward(x, params):
    h1 = jax.nn.sigmoid(x @ params["w1"] + params["b1"])
    h2 = jax.nn.sigmoid(h1 @ params["w2"] + params["b2"])
    return h2 @ params["w3"] + params["b3"]


# ----------------------------- demo / check -----------------------------------


if __name__ == "__main__":
    key = jax.random.PRNGKey(0)
    k_x, k_p = jax.random.split(key)

    # NOTE: at these toy sizes plain XLA would beat any hand-written kernel;
    # the tiling/bf16/padding choices above are what matter at production sizes.
    batch, input_dim, hidden_dim, output_dim = 8, 16, 32, 8

    x = jax.random.normal(k_x, (batch, input_dim), jnp.float32)
    params = init_params(k_p, input_dim, hidden_dim, output_dim)

    y_ref = reference_forward(x, params)

    # Default path: bf16 matmul operands, f32 accumulation/epilogue.
    y = jax.block_until_ready(fully_connected_nn(x, params))
    assert y.shape == (batch, output_dim)
    assert jnp.allclose(y, y_ref, atol=5e-2, rtol=5e-2), float(
        jnp.max(jnp.abs(y - y_ref)))

    # Full-precision path sanity check.
    y_f32 = jax.block_until_ready(
        fully_connected_nn(x, params, compute_dtype=jnp.float32))
    assert jnp.allclose(y_f32, y_ref, atol=1e-4, rtol=1e-4), float(
        jnp.max(jnp.abs(y_f32 - y_ref)))

    print("KERNEL_OK")
</pallas_src>

<mosaic_0001>
module attributes {stable_mosaic.version = 11 : i64} {
  func.func @_mlp_kernel(%arg0: i32, %arg1: memref<8x128xbf16, #tpu.memory_space<vmem>>, %arg2: memref<128x128xbf16, #tpu.memory_space<vmem>>, %arg3: memref<1x128xf32, #tpu.memory_space<vmem>>, %arg4: memref<128x128xbf16, #tpu.memory_space<vmem>>, %arg5: memref<1x128xf32, #tpu.memory_space<vmem>>, %arg6: memref<128x128xbf16, #tpu.memory_space<vmem>>, %arg7: memref<1x128xf32, #tpu.memory_space<vmem>>, %arg8: memref<8x128xf32, #tpu.memory_space<vmem>>) attributes {dimension_semantics = [#tpu.dimension_semantics<parallel>], iteration_bounds = array<i64: 1>, scalar_prefetch = 0 : i64, scratch_operands = 0 : i64, tpu.core_type = #tpu.core_type<tc>, window_params = [{transform_indices = @transform_0, window_bounds = array<i64: 8, 128>}, {pipeline_mode = #tpu.pipeline_mode<synchronous>, transform_indices = @transform_1, window_bounds = array<i64: 128, 128>}, {pipeline_mode = #tpu.pipeline_mode<synchronous>, transform_indices = @transform_2, window_bounds = array<i64: 1, 128>}, {pipeline_mode = #tpu.pipeline_mode<synchronous>, transform_indices = @transform_3, window_bounds = array<i64: 128, 128>}, {pipeline_mode = #tpu.pipeline_mode<synchronous>, transform_indices = @transform_4, window_bounds = array<i64: 1, 128>}, {pipeline_mode = #tpu.pipeline_mode<synchronous>, transform_indices = @transform_5, window_bounds = array<i64: 128, 128>}, {pipeline_mode = #tpu.pipeline_mode<synchronous>, transform_indices = @transform_6, window_bounds = array<i64: 1, 128>}, {transform_indices = @transform_7, window_bounds = array<i64: 8, 128>}]} {
    %c0 = arith.constant 0 : index
    %c0_0 = arith.constant 0 : index
    %0 = vector.load %arg1[%c0, %c0_0] : memref<8x128xbf16, #tpu.memory_space<vmem>>, vector<8x128xbf16>
    %c0_1 = arith.constant 0 : index
    %c0_2 = arith.constant 0 : index
    %1 = vector.load %arg2[%c0_1, %c0_2] : memref<128x128xbf16, #tpu.memory_space<vmem>>, vector<128x128xbf16>
    %cst = arith.constant dense<0.000000e+00> : vector<8x128xf32>
    %2 = tpu.matmul %0, %1, %cst {dimension_numbers = #tpu.dot_dimension_numbers<[1], [0], [0], [1], [0, 0, 1, 1], [], []>} : vector<8x128xbf16>, vector<128x128xbf16>, vector<8x128xf32> -> vector<8x128xf32>
    %c0_3 = arith.constant 0 : index
    %c0_4 = arith.constant 0 : index
    %3 = vector.load %arg3[%c0_3, %c0_4] : memref<1x128xf32, #tpu.memory_space<vmem>>, vector<1x128xf32>
    %4 = vector.broadcast %3 : vector<1x128xf32> to vector<8x128xf32>
    %5 = arith.addf %2, %4 : vector<8x128xf32>
    %6 = arith.negf %5 : vector<8x128xf32>
    %7 = math.exp %6 : vector<8x128xf32>
    %cst_5 = arith.constant 1.000000e+00 : f32
    %8 = vector.broadcast %cst_5 : f32 to vector<8x128xf32>
    %9 = arith.addf %8, %7 : vector<8x128xf32>
    %10 = arith.divf %8, %9 : vector<8x128xf32>
    %11 = arith.truncf %10 : vector<8x128xf32> to vector<8x128xbf16>
    %c0_6 = arith.constant 0 : index
    %c0_7 = arith.constant 0 : index
    %12 = vector.load %arg4[%c0_6, %c0_7] : memref<128x128xbf16, #tpu.memory_space<vmem>>, vector<128x128xbf16>
    %cst_8 = arith.constant dense<0.000000e+00> : vector<8x128xf32>
    %13 = tpu.matmul %11, %12, %cst_8 {dimension_numbers = #tpu.dot_dimension_numbers<[1], [0], [0], [1], [0, 0, 1, 1], [], []>} : vector<8x128xbf16>, vector<128x128xbf16>, vector<8x128xf32> -> vector<8x128xf32>
    %c0_9 = arith.constant 0 : index
    %c0_10 = arith.constant 0 : index
    %14 = vector.load %arg5[%c0_9, %c0_10] : memref<1x128xf32, #tpu.memory_space<vmem>>, vector<1x128xf32>
    %15 = vector.broadcast %14 : vector<1x128xf32> to vector<8x128xf32>
    %16 = arith.addf %13, %15 : vector<8x128xf32>
    %17 = arith.negf %16 : vector<8x128xf32>
    %18 = math.exp %17 : vector<8x128xf32>
    %cst_11 = arith.constant 1.000000e+00 : f32
    %19 = vector.broadcast %cst_11 : f32 to vector<8x128xf32>
    %20 = arith.addf %19, %18 : vector<8x128xf32>
    %21 = arith.divf %19, %20 : vector<8x128xf32>
    %22 = arith.truncf %21 : vector<8x128xf32> to vector<8x128xbf16>
    %c0_12 = arith.constant 0 : index
    %c0_13 = arith.constant 0 : index
    %23 = vector.load %arg6[%c0_12, %c0_13] : memref<128x128xbf16, #tpu.memory_space<vmem>>, vector<128x128xbf16>
    %cst_14 = arith.constant dense<0.000000e+00> : vector<8x128xf32>
    %24 = tpu.matmul %22, %23, %cst_14 {dimension_numbers = #tpu.dot_dimension_numbers<[1], [0], [0], [1], [0, 0, 1, 1], [], []>} : vector<8x128xbf16>, vector<128x128xbf16>, vector<8x128xf32> -> vector<8x128xf32>
    %c0_15 = arith.constant 0 : index
    %c0_16 = arith.constant 0 : index
    %25 = vector.load %arg7[%c0_15, %c0_16] : memref<1x128xf32, #tpu.memory_space<vmem>>, vector<1x128xf32>
    %26 = vector.broadcast %25 : vector<1x128xf32> to vector<8x128xf32>
    %27 = arith.addf %24, %26 : vector<8x128xf32>
    %c0_17 = arith.constant 0 : index
    %c0_18 = arith.constant 0 : index
    %28 = vector.load %arg8[%c0_17, %c0_18] : memref<8x128xf32, #tpu.memory_space<vmem>>, vector<8x128xf32>
    tpu.vector_store %arg8[%c0_17, %c0_18], %27 {strides = array<i32>} : memref<8x128xf32, #tpu.memory_space<vmem>>, vector<8x128xf32>,
    return
  }
  func.func @transform_0(%arg0: i32) -> (i32, i32) {
    %c0_i32 = arith.constant 0 : i32
    %c0_i32_0 = arith.constant 0 : i32
    return %arg0, %c0_i32 : i32, i32
  }
  func.func @transform_1(%arg0: i32) -> (i32, i32) {
    %c0_i32 = arith.constant 0 : i32
    %c0_i32_0 = arith.constant 0 : i32
    %c0_i32_1 = arith.constant 0 : i32
    return %c0_i32, %c0_i32_0 : i32, i32
  }
  func.func @transform_2(%arg0: i32) -> (i32, i32) {
    %c0_i32 = arith.constant 0 : i32
    %c0_i32_0 = arith.constant 0 : i32
    %c0_i32_1 = arith.constant 0 : i32
    return %c0_i32, %c0_i32_0 : i32, i32
  }
  func.func @transform_3(%arg0: i32) -> (i32, i32) {
    %c0_i32 = arith.constant 0 : i32
    %c0_i32_0 = arith.constant 0 : i32
    %c0_i32_1 = arith.constant 0 : i32
    return %c0_i32, %c0_i32_0 : i32, i32
  }
  func.func @transform_4(%arg0: i32) -> (i32, i32) {
    %c0_i32 = arith.constant 0 : i32
    %c0_i32_0 = arith.constant 0 : i32
    %c0_i32_1 = arith.constant 0 : i32
    return %c0_i32, %c0_i32_0 : i32, i32
  }
  func.func @transform_5(%arg0: i32) -> (i32, i32) {
    %c0_i32 = arith.constant 0 : i32
    %c0_i32_0 = arith.constant 0 : i32
    %c0_i32_1 = arith.constant 0 : i32
    return %c0_i32, %c0_i32_0 : i32, i32
  }
  func.func @transform_6(%arg0: i32) -> (i32, i32) {
    %c0_i32 = arith.constant 0 : i32
    %c0_i32_0 = arith.constant 0 : i32
    %c0_i32_1 = arith.constant 0 : i32
    return %c0_i32, %c0_i32_0 : i32, i32
  }
  func.func @transform_7(%arg0: i32) -> (i32, i32) {
    %c0_i32 = arith.constant 0 : i32
    %c0_i32_0 = arith.constant 0 : i32
    return %arg0, %c0_i32 : i32, i32
  }
}

module attributes {stable_mosaic.version = 11 : i64} {
  func.func @_mlp_kernel(%arg0: i32, %arg1: memref<8x128xbf16, #tpu.memory_space<vmem>>, %arg2: memref<128x128xbf16, #tpu.memory_space<vmem>>, %arg3: memref<1x128xf32, #tpu.memory_space<vmem>>, %arg4: memref<128x128xbf16, #tpu.memory_space<vmem>>, %arg5: memref<1x128xf32, #tpu.memory_space<vmem>>, %arg6: memref<128x128xbf16, #tpu.memory_space<vmem>>, %arg7: memref<1x128xf32, #tpu.memory_space<vmem>>, %arg8: memref<8x128xf32, #tpu.memory_space<vmem>>) attributes {dimension_semantics = [#tpu.dimension_semantics<parallel>], iteration_bounds = array<i64: 1>, scalar_prefetch = 0 : i64, scratch_operands = 0 : i64, tpu.core_type = #tpu.core_type<tc>, window_params = [{transform_indices = @transform_0, window_bounds = array<i64: 8, 128>}, {pipeline_mode = #tpu.pipeline_mode<synchronous>, transform_indices = @transform_1, window_bounds = array<i64: 128, 128>}, {pipeline_mode = #tpu.pipeline_mode<synchronous>, transform_indices = @transform_2, window_bounds = array<i64: 1, 128>}, {pipeline_mode = #tpu.pipeline_mode<synchronous>, transform_indices = @transform_3, window_bounds = array<i64: 128, 128>}, {pipeline_mode = #tpu.pipeline_mode<synchronous>, transform_indices = @transform_4, window_bounds = array<i64: 1, 128>}, {pipeline_mode = #tpu.pipeline_mode<synchronous>, transform_indices = @transform_5, window_bounds = array<i64: 128, 128>}, {pipeline_mode = #tpu.pipeline_mode<synchronous>, transform_indices = @transform_6, window_bounds = array<i64: 1, 128>}, {transform_indices = @transform_7, window_bounds = array<i64: 8, 128>}]} {
    %c0 = arith.constant 0 : index
    %c0_0 = arith.constant 0 : index
    %0 = vector.load %arg1[%c0, %c0_0] : memref<8x128xbf16, #tpu.memory_space<vmem>>, vector<8x128xbf16>
    %c0_1 = arith.constant 0 : index
    %c0_2 = arith.constant 0 : index
    %1 = vector.load %arg2[%c0_1, %c0_2] : memref<128x128xbf16, #tpu.memory_space<vmem>>, vector<128x128xbf16>
    %cst = arith.constant dense<0.000000e+00> : vector<8x128xf32>
    %2 = tpu.matmul %0, %1, %cst {dimension_numbers = #tpu.dot_dimension_numbers<[1], [0], [0], [1], [0, 0, 1, 1], [], []>} : vector<8x128xbf16>, vector<128x128xbf16>, vector<8x128xf32> -> vector<8x128xf32>
    %c0_3 = arith.constant 0 : index
    %c0_4 = arith.constant 0 : index
    %3 = vector.load %arg3[%c0_3, %c0_4] : memref<1x128xf32, #tpu.memory_space<vmem>>, vector<1x128xf32>
    %4 = vector.broadcast %3 : vector<1x128xf32> to vector<8x128xf32>
    %5 = arith.addf %2, %4 : vector<8x128xf32>
    %6 = arith.negf %5 : vector<8x128xf32>
    %7 = math.exp %6 : vector<8x128xf32>
    %cst_5 = arith.constant 1.000000e+00 : f32
    %8 = vector.broadcast %cst_5 : f32 to vector<8x128xf32>
    %9 = arith.addf %8, %7 : vector<8x128xf32>
    %10 = arith.divf %8, %9 : vector<8x128xf32>
    %11 = arith.truncf %10 : vector<8x128xf32> to vector<8x128xbf16>
    %c0_6 = arith.constant 0 : index
    %c0_7 = arith.constant 0 : index
    %12 = vector.load %arg4[%c0_6, %c0_7] : memref<128x128xbf16, #tpu.memory_space<vmem>>, vector<128x128xbf16>
    %cst_8 = arith.constant dense<0.000000e+00> : vector<8x128xf32>
    %13 = tpu.matmul %11, %12, %cst_8 {dimension_numbers = #tpu.dot_dimension_numbers<[1], [0], [0], [1], [0, 0, 1, 1], [], []>} : vector<8x128xbf16>, vector<128x128xbf16>, vector<8x128xf32> -> vector<8x128xf32>
    %c0_9 = arith.constant 0 : index
    %c0_10 = arith.constant 0 : index
    %14 = vector.load %arg5[%c0_9, %c0_10] : memref<1x128xf32, #tpu.memory_space<vmem>>, vector<1x128xf32>
    %15 = vector.broadcast %14 : vector<1x128xf32> to vector<8x128xf32>
    %16 = arith.addf %13, %15 : vector<8x128xf32>
    %17 = arith.negf %16 : vector<8x128xf32>
    %18 = math.exp %17 : vector<8x128xf32>
    %cst_11 = arith.constant 1.000000e+00 : f32
    %19 = vector.broadcast %cst_11 : f32 to vector<8x128xf32>
    %20 = arith.addf %19, %18 : vector<8x128xf32>
    %21 = arith.divf %19, %20 : vector<8x128xf32>
    %22 = arith.truncf %21 : vector<8x128xf32> to vector<8x128xbf16>
    %c0_12 = arith.constant 0 : index
    %c0_13 = arith.constant 0 : index
    %23 = vector.load %arg6[%c0_12, %c0_13] : memref<128x128xbf16, #tpu.memory_space<vmem>>, vector<128x128xbf16>
    %cst_14 = arith.constant dense<0.000000e+00> : vector<8x128xf32>
    %24 = tpu.matmul %22, %23, %cst_14 {dimension_numbers = #tpu.dot_dimension_numbers<[1], [0], [0], [1], [0, 0, 1, 1], [], []>} : vector<8x128xbf16>, vector<128x128xbf16>, vector<8x128xf32> -> vector<8x128xf32>
    %c0_15 = arith.constant 0 : index
    %c0_16 = arith.constant 0 : index
    %25 = vector.load %arg7[%c0_15, %c0_16] : memref<1x128xf32, #tpu.memory_space<vmem>>, vector<1x128xf32>
    %26 = vector.broadcast %25 : vector<1x128xf32> to vector<8x128xf32>
    %27 = arith.addf %24, %26 : vector<8x128xf32>
    %c0_17 = arith.constant 0 : index
    %c0_18 = arith.constant 0 : index
    %28 = vector.load %arg8[%c0_17, %c0_18] : memref<8x128xf32, #tpu.memory_space<vmem>>, vector<8x128xf32>
    tpu.vector_store %arg8[%c0_17, %c0_18], %27 {strides = array<i32>} : memref<8x128xf32, #tpu.memory_space<vmem>>, vector<8x128xf32>,
    return
  }
  func.func @transform_0(%arg0: i32) -> (i32, i32) {
    %c0_i32 = arith.constant 0 : i32
    %c0_i32_0 = arith.constant 0 : i32
    return %arg0, %c0_i32 : i32, i32
  }
  func.func @transform_1(%arg0: i32) -> (i32, i32) {
    %c0_i32 = arith.constant 0 : i32
    %c0_i32_0 = arith.constant 0 : i32
    %c0_i32_1 = arith.constant 0 : i32
    return %c0_i32, %c0_i32_0 : i32, i32
  }
  func.func @transform_2(%arg0: i32) -> (i32, i32) {
    %c0_i32 = arith.constant 0 : i32
    %c0_i32_0 = arith.constant 0 : i32
    %c0_i32_1 = arith.constant 0 : i32
    return %c0_i32, %c0_i32_0 : i32, i32
  }
  func.func @transform_3(%arg0: i32) -> (i32, i32) {
    %c0_i32 = arith.constant 0 : i32
    %c0_i32_0 = arith.constant 0 : i32
    %c0_i32_1 = arith.constant 0 : i32
    return %c0_i32, %c0_i32_0 : i32, i32
  }
  func.func @transform_4(%arg0: i32) -> (i32, i32) {
    %c0_i32 = arith.constant 0 : i32
    %c0_i32_0 = arith.constant 0 : i32
    %c0_i32_1 = arith.constant 0 : i32
    return %c0_i32, %c0_i32_0 : i32, i32
  }
  func.func @transform_5(%arg0: i32) -> (i32, i32) {
    %c0_i32 = arith.constant 0 : i32
    %c0_i32_0 = arith.constant 0 : i32
    %c0_i32_1 = arith.constant 0 : i32
    return %c0_i32, %c0_i32_0 : i32, i32
  }
  func.func @transform_6(%arg0: i32) -> (i32, i32) {
    %c0_i32 = arith.constant 0 : i32
    %c0_i32_0 = arith.constant 0 : i32
    %c0_i32_1 = arith.constant 0 : i32
    return %c0_i32, %c0_i32_0 : i32, i32
  }
  func.func @transform_7(%arg0: i32) -> (i32, i32) {
    %c0_i32 = arith.constant 0 : i32
    %c0_i32_0 = arith.constant 0 : i32
    return %arg0, %c0_i32 : i32, i32
  }
}

</mosaic_0001>

<bundles_post_ra>
// kernel: tpu_custom_call.1
= control target key start
LH: loop header
LB: loop body
LE: loop exit
PB: predicated region body
PF: predicated region fallthrough
CT: control target
= control target key end

     0   :  { %12 = vsyncpa [#allocation3], 0  ;;  %s879_s0 = inlined_call_operand.hbm [shape: bf16[8,128], index: 0, kind: input, shape index: {}]   ;;  %s880_s1 = inlined_call_operand.hbm [shape: bf16[128,128], index: 1, kind: input, shape index: {}]   ;;  %s881_s2 = inlined_call_operand.vmem [shape: f32[1,128], index: 2, kind: input, shape index: {}]   ;;  %s882_s3 = inlined_call_operand.hbm [shape: bf16[128,128], index: 3, kind: input, shape index: {}]   ;;  %s883_s4 = inlined_call_operand.vmem [shape: f32[1,128], index: 4, kind: input, shape index: {}]   ;;  %s884_s5 = inlined_call_operand.hbm [shape: bf16[128,128], index: 5, kind: input, shape index: {}]   ;;  %s885_s6 = inlined_call_operand.vmem [shape: f32[1,128], index: 6, kind: input, shape index: {}]   ;;  %s886_s7 = inlined_call_operand.hbm [shape: f32[8,128], index: 7, kind: output, shape index: {}]  }
   0x1   :  { %13 = vsyncpa [#allocation6], 0 }
   0x2   :  { %14 = vsyncpa [#allocation9], 0 }
   0x3   :  { %15 = vsyncpa [#allocation4], 0  ;;  %s722_s24 = smov [#allocation5]   ;;  %s604_s28 = scalar_lea.hbm %s880_s1, 1024 }
   0x4   :  { %s31_s25 = sshll.u32 %s722_s24, 4  ;;  %p605_p0 = scmp.ne.s32.totalorder %s880_s1, %s604_s28  ;;  %s32_s25 = int_to_ptr.vmem [resolvable:$true] %s31_s25 }
   0x5   :  { %p608_p1 = scmp.lt.u32.totalorder %s604_s28, %s880_s1 }
   0x7   :  { %p610_p2 = pnand %p608_p1, %p605_p0 }
   0x9   :  { %613 = shalt.err (!%p610_p2)
}
   0xa   :  { %s614_s10 = scalar_lea.vmem %s32_s25, 1024  ;;  %p619_p4 = scmp.lt.s32.totalorder %s32_s25, %s32_s25 }
   0xb   :  { %p615_p3 = scmp.ne.s32.totalorder %s32_s25, %s614_s10  ;;  %p620_p5 = scmp.lt.s32.totalorder %s614_s10, %s614_s10 }
   0xd   :  { %p621_p6 = por %p620_p5, %p619_p4 }
   0xf   :  { %p622_p7 = pnand %p621_p6, %p615_p3 }
  0x11   :  { %625 = shalt.err (!%p622_p7)
}
  0x12   :  { %s723_s11 = smov 64   ;;  %s724_s12 = smov 4  }
  0x13   :  { %37 = dma.hbm_to_vmem [thread:$0]  %s880_s1, 1024, %s32_s25, [#allocation6], %s723_s11, %s723_s11, %s724_s12  }
  0x14   :  { %s725_s15 = smov [#allocation2]   ;;  %s726_s17 = smov [#allocation7]  }
  0x15   :  { %s22_s16 = sshll.u32 %s725_s15, 4  ;;  %s45_s18 = sshll.u32 %s726_s17, 4  ;;  %s23_s16 = int_to_ptr.vmem [resolvable:$true] %s22_s16  ;;  %s46_s18 = int_to_ptr.vmem [resolvable:$true] %s45_s18 }
  0x16   :  { %s626_s21 = scalar_lea.hbm %s879_s0, 64 }
  0x17   :  { %p627_p8 = scmp.ne.s32.totalorder %s879_s0, %s626_s21  ;;  %p630_p9 = scmp.lt.u32.totalorder %s626_s21, %s879_s0 }
  0x19   :  { %p632_p10 = pnand %p630_p9, %p627_p8 }
  0x1b   :  { %635 = shalt.err (!%p632_p10)
}
  0x1c   :  { %s636_s1 = scalar_lea.vmem %s23_s16, 64  ;;  %p641_p12 = scmp.lt.s32.totalorder %s23_s16, %s23_s16 }
  0x1d   :  { %p637_p11 = scmp.ne.s32.totalorder %s23_s16, %s636_s1  ;;  %p642_p13 = scmp.lt.s32.totalorder %s636_s1, %s636_s1 }
  0x1f   :  { %p643_p0 = por %p642_p13, %p641_p12 }
  0x21   :  { %p644_p1 = pnand %p643_p0, %p637_p11 }
  0x23   :  { %647 = shalt.err (!%p644_p1)
}
  0x24   :  { %25 = dma.hbm_to_vmem [thread:$0]  %s879_s0, 64, %s23_s16, [#allocation3]  }
  0x25   :  { %s648_s30 = scalar_lea.hbm %s882_s3, 1024 }
  0x26   :  { %p649_p2 = scmp.ne.s32.totalorder %s882_s3, %s648_s30  ;;  %p652_p3 = scmp.lt.u32.totalorder %s648_s30, %s882_s3 }
  0x28   :  { %p654_p4 = pnand %p652_p3, %p649_p2 }
  0x2a   :  { %657 = shalt.err (!%p654_p4)
}
  0x2b   :  { %s658_s14 = scalar_lea.vmem %s46_s18, 1024  ;;  %p663_p6 = scmp.lt.s32.totalorder %s46_s18, %s46_s18 }
  0x2c   :  { %p659_p5 = scmp.ne.s32.totalorder %s46_s18, %s658_s14  ;;  %p664_p7 = scmp.lt.s32.totalorder %s658_s14, %s658_s14 }
  0x2e   :  { %p665_p8 = por %p664_p7, %p663_p6 }
  0x30   :  { %p666_p9 = pnand %p665_p8, %p659_p5 }
  0x32   :  { %669 = shalt.err (!%p666_p9)
}
  0x33   :  { %51 = dma.hbm_to_vmem [thread:$0]  %s882_s3, 1024, %s46_s18, [#allocation6], %s723_s11, %s723_s11, %s724_s12  }
  0x34   :  { %s727_s16 = smov [#allocation8]   ;;  %s670_s21 = scalar_lea.hbm %s884_s5, 1024 }
  0x35   :  { %s59_s17 = sshll.u32 %s727_s16, 4  ;;  %p671_p10 = scmp.ne.s32.totalorder %s884_s5, %s670_s21  ;;  %s60_s17 = int_to_ptr.vmem [resolvable:$true] %s59_s17 }
  0x36   :  { %p674_p11 = scmp.lt.u32.totalorder %s670_s21, %s884_s5 }
  0x38   :  { %p676_p12 = pnand %p674_p11, %p671_p10 }
  0x3a   :  { %679 = shalt.err (!%p676_p12)
}
  0x3b   :  { %s680_s1 = scalar_lea.vmem %s60_s17, 1024  ;;  %p685_p0 = scmp.lt.s32.totalorder %s60_s17, %s60_s17 }
  0x3c   :  { %p681_p13 = scmp.ne.s32.totalorder %s60_s17, %s680_s1  ;;  %p686_p1 = scmp.lt.s32.totalorder %s680_s1, %s680_s1 }
  0x3e   :  { %p687_p2 = por %p686_p1, %p685_p0 }
  0x40   :  { %p688_p3 = pnand %p687_p2, %p681_p13 }
  0x42   :  { %691 = shalt.err (!%p688_p3)
}
  0x43   :  { %65 = dma.hbm_to_vmem [thread:$0]  %s884_s5, 1024, %s60_s17, [#allocation9], %s723_s11, %s723_s11, %s724_s12  }
  0x44   :  { %714 = dma.done.wait [#allocation3], 64  }
  0x45   :  { %715 = vsyncadd [#allocation3], 4294967232 }
  0x46   :  { %716 = dma.done.wait [#allocation6], 2048  }
  0x47   :  { %717 = vsyncadd [#allocation6], 4294965248 }
  0x48   :  { %718 = dma.done.wait [#allocation9], 1024  }
  0x49   :  { %719 = vsyncadd [#allocation9], 4294966272  ;;  %v728_v0 = vmov 0.0   ;;  %vm729_vm0 = vmmov 0   ;;  %v572_v1 = vld [vmem:[#allocation5] sm:$0xff]   ;;  %v573_v2 = vld [vmem:[#allocation5 + $0x8] sm:$0xff]  }
  0x4a   :  { %503 = vmatprep.subr.bf16.mxu0 %v728_v0  ;;  %519 = vmatprep.mubr.msk.bf16.mxu0 %vm729_vm0, %v728_v0  ;;  %v574_v3 = vld [vmem:[#allocation5 + $0x10] sm:$0xff]   ;;  %v575_v4 = vld [vmem:[#allocation5 + $0x18] sm:$0xff]   ;;  %v576_v5 = vld [vmem:[#allocation5 + $0x20] sm:$0xff]   ;;  %s730_s28 = smov [#allocation10]  }
  0x4b   :  { %523 = vmatprep.subr.bf16.mxu1 %v728_v0  ;;  %539 = vmatprep.mubr.msk.bf16.mxu1 %vm729_vm0, %v728_v0  ;;  %v577_v6 = vld [vmem:[#allocation5 + $0x28] sm:$0xff]   ;;  %v578_v7 = vld [vmem:[#allocation5 + $0x30] sm:$0xff]   ;;  %v579_v8 = vld [vmem:[#allocation5 + $0x38] sm:$0xff]   ;;  %s436_s29 = sshll.u32 %s730_s28, 4  ;;  %s437_s29 = int_to_ptr.vmem [resolvable:$true] %s436_s29 }
  0x4c   :  { %504 = vmatpush3.bf16.msra.mxu0 %v572_v1  ;;  %v81_v9 = vld [vmem:[#allocation2] sm:$0xf]  ;;  %v580_v10 = vld [vmem:[#allocation7] sm:$0xff]   ;;  %v581_v11 = vld [vmem:[#allocation7 + $0x8] sm:$0xff]   ;;  %p697_p5 = scmp.lt.s32.totalorder %s437_s29, %s437_s29 }
  0x4d   :  { %505 = vmatprep.subr.bf16.mxu0 %v728_v0  ;;  %524 = vmatpush3.bf16.msra.mxu1 %v580_v10  ;;  %v582_v12 = vld [vmem:[#allocation7 + $0x10] sm:$0xff]   ;;  %v583_v13 = vld [vmem:[#allocation7 + $0x18] sm:$0xff]   ;;  %v584_v14 = vld [vmem:[#allocation7 + $0x20] sm:$0xff]  }
  0x4e   :  { %525 = vmatprep.subr.bf16.mxu1 %v728_v0  ;;  %v585_v15 = vld [vmem:[#allocation7 + $0x28] sm:$0xff]   ;;  %v586_v16 = vld [vmem:[#allocation7 + $0x30] sm:$0xff]   ;;  %v587_v17 = vld [vmem:[#allocation7 + $0x38] sm:$0xff]  }
  0x4f   :  { %v447_v18 = vld [vmem:[%s881_s2] ss:$0 sm:$0xff]  ;;  %v588_v29 = vld [vmem:[#allocation8] sm:$0xff]   ;;  %v589_v30 = vld [vmem:[#allocation8 + $0x8] sm:$0xff]  }
  0x50   :  { %506 = vmatpush3.bf16.msra.mxu0 %v573_v2  ;;  %v590_v31 = vld [vmem:[#allocation8 + $0x10] sm:$0xff]   ;;  %v591_v32 = vld [vmem:[#allocation8 + $0x18] sm:$0xff]   ;;  %v592_v33 = vld [vmem:[#allocation8 + $0x20] sm:$0xff]  }
  0x51   :  { %507 = vmatprep.subr.bf16.mxu0 %v728_v0  ;;  %526 = vmatpush3.bf16.msra.mxu1 %v581_v11  ;;  %v593_v34 = vld [vmem:[#allocation8 + $0x28] sm:$0xff]   ;;  %v594_v35 = vld [vmem:[#allocation8 + $0x30] sm:$0xff]   ;;  %v595_v36 = vld [vmem:[#allocation8 + $0x38] sm:$0xff]  }
  0x52   :  { %527 = vmatprep.subr.bf16.mxu1 %v728_v0  ;;  %v457_v37 = vld [vmem:[%s883_s4] ss:$0 sm:$0xff]  ;;  %s692_s4 = scalar_lea.vmem %s437_s29, 128 }
  0x53   :  { %v467_v48 = vld [vmem:[%s885_s6] ss:$0 sm:$0xff]  ;;  %p693_p4 = scmp.ne.s32.totalorder %s437_s29, %s692_s4  ;;  %p698_p6 = scmp.lt.s32.totalorder %s692_s4, %s692_s4 }
  0x54   :  { %508 = vmatpush3.bf16.msra.mxu0 %v574_v3 }
  0x55   :  { %509 = vmatprep.subr.bf16.mxu0 %v728_v0  ;;  %528 = vmatpush3.bf16.msra.mxu1 %v582_v12  ;;  %p699_p7 = por %p698_p6, %p697_p5 }
  0x56   :  { %529 = vmatprep.subr.bf16.mxu1 %v728_v0 }
  0x57   :  { %p700_p8 = pnand %p699_p7, %p693_p4 }
  0x58   :  { %510 = vmatpush3.bf16.msra.mxu0 %v575_v4 }
  0x59   :  { %511 = vmatprep.subr.bf16.mxu0 %v728_v0  ;;  %530 = vmatpush3.bf16.msra.mxu1 %v583_v13 }
  0x5a   :  { %531 = vmatprep.subr.bf16.mxu1 %v728_v0 }
  0x5c   :  { %512 = vmatpush3.bf16.msra.mxu0 %v576_v5 }
  0x5d   :  { %513 = vmatprep.subr.bf16.mxu0 %v728_v0  ;;  %532 = vmatpush3.bf16.msra.mxu1 %v584_v14 }
  0x5e   :  { %533 = vmatprep.subr.bf16.mxu1 %v728_v0 }
  0x60   :  { %514 = vmatpush3.bf16.msra.mxu0 %v577_v6 }
  0x61   :  { %515 = vmatprep.subr.bf16.mxu0 %v728_v0  ;;  %534 = vmatpush3.bf16.msra.mxu1 %v585_v15 }
  0x62   :  { %535 = vmatprep.subr.bf16.mxu1 %v728_v0 }
  0x64   :  { %516 = vmatpush3.bf16.msra.mxu0 %v578_v7 }
  0x65   :  { %517 = vmatprep.subr.bf16.mxu0 %v728_v0  ;;  %536 = vmatpush3.bf16.msra.mxu1 %v586_v16 }
  0x66   :  { %537 = vmatprep.subr.bf16.mxu1 %v728_v0 }
  0x68   :  { %518 = vmatpush3.bf16.msra.mxu0 %v579_v8 }
  0x69   :  { %543 = vmatprep.subr.bf16.mxu0 %v728_v0  ;;  %538 = vmatpush3.bf16.msra.mxu1 %v587_v17 }
  0x6b   :  { %520 = vmatmul.mubr.bf16.vlgmr.msra.gmra.mrb[0].mxu0 %v81_v9 }
  0x6c   :  { %559 = vmatprep.mubr.msk.bf16.mxu0 %vm729_vm0, %v728_v0  ;;  %544 = vmatpush3.bf16.msra.mxu0 %v588_v29 }
  0x6d   :  { %545 = vmatprep.subr.bf16.mxu0 %v728_v0 }
  0x70   :  { %546 = vmatpush3.bf16.msra.mxu0 %v589_v30 }
  0x71   :  { %547 = vmatprep.subr.bf16.mxu0 %v728_v0 }
  0x74   :  { %548 = vmatpush3.bf16.msra.mxu0 %v590_v31 }
  0x75   :  { %549 = vmatprep.subr.bf16.mxu0 %v728_v0 }
  0x78   :  { %550 = vmatpush3.bf16.msra.mxu0 %v591_v32 }
  0x79   :  { %551 = vmatprep.subr.bf16.mxu0 %v728_v0 }
  0x7c   :  { %552 = vmatpush3.bf16.msra.mxu0 %v592_v33 }
  0x7d   :  { %553 = vmatprep.subr.bf16.mxu0 %v728_v0 }
  0x80   :  { %554 = vmatpush3.bf16.msra.mxu0 %v593_v34 }
  0x81   :  { %555 = vmatprep.subr.bf16.mxu0 %v728_v0 }
  0x84   :  { %556 = vmatpush3.bf16.msra.mxu0 %v594_v35 }
  0x85   :  { %557 = vmatprep.subr.bf16.mxu0 %v728_v0 }
  0x88   :  { %558 = vmatpush3.bf16.msra.mxu0 %v595_v36 }
 0x13e   :  { %v187_v19 = vpop.f32.mrb[0].mxu0 }
 0x13f   :  { %v188_v20 = vadd.f32 %v447_v18, %v187_v19  ;;  %v521_v21 = vpop.f32.mrb[1].mxu0 }
 0x140   :  { %v190_v22 = vpop.f32.mrb[2].mxu0 }
 0x141   :  { %v456_v23 = vmul.f32 -1.442695, %v188_v20  ;;  %v522_v24 = vpop.f32.mrb[3].mxu0 }
 0x143   :  { %596 = vpow2.f32 %v456_v23 }
 0x14d   :  { %v597_v25 = vpop.eup %596 }
 0x14e   :  { %v196_v26 = vadd.f32 1.0, %v597_v25 }
 0x150   :  { %598 = vrcp.f32 %v196_v26 }
 0x15a   :  { %v599_v27 = vpop.eup %598 }
 0x15b   :  { %v199_v28 = vpack.c.bf16 %v599_v27, %v599_v27 }
 0x15d   :  { %540 = vmatmul.mubr.bf16.vlgmr.msra.gmra.mrb[0].mxu1 %v199_v28 }
 0x230   :  { %v305_v38 = vpop.f32.mrb[0].mxu1 }
 0x231   :  { %v306_v39 = vadd.f32 %v457_v37, %v305_v38  ;;  %v541_v40 = vpop.f32.mrb[1].mxu1 }
 0x232   :  { %v308_v41 = vpop.f32.mrb[2].mxu1 }
 0x233   :  { %v466_v42 = vmul.f32 -1.442695, %v306_v39  ;;  %v542_v43 = vpop.f32.mrb[3].mxu1 }
 0x235   :  { %600 = vpow2.f32 %v466_v42 }
 0x23f   :  { %v601_v44 = vpop.eup %600 }
 0x240   :  { %v314_v45 = vadd.f32 1.0, %v601_v44 }
 0x242   :  { %602 = vrcp.f32 %v314_v45 }
 0x24c   :  { %v603_v46 = vpop.eup %602 }
 0x24d   :  { %v317_v47 = vpack.c.bf16 %v603_v46, %v603_v46 }
 0x24f   :  { %560 = vmatmul.mubr.bf16.vlgmr.msra.gmra.mrb[4].mxu0 %v317_v47 }
 0x322   :  { %v423_v49 = vpop.f32.mrb[4].mxu0 }
 0x323   :  { %v424_v50 = vadd.f32 %v467_v48, %v423_v49  ;;  %v561_v51 = vpop.f32.mrb[5].mxu0 }
 0x324   :  { %v426_v52 = vpop.f32.mrb[6].mxu0 }
 0x325   :  { %429 = vst [vmem:[#allocation10] sm:$0xff] %v424_v50  ;;  %v562_v53 = vpop.f32.mrb[7].mxu0 }
 0x326   :  { %703 = shalt.err (!%p700_p8)
}
 0x327   :  { %s704_s6 = scalar_lea.hbm %s886_s7, 128 }
 0x328   :  { %p705_p9 = scmp.ne.s32.totalorder %s886_s7, %s704_s6  ;;  %p708_p10 = scmp.lt.u32.totalorder %s704_s6, %s886_s7 }
 0x32a   :  { %p710_p11 = pnand %p708_p10, %p705_p9 }
 0x32c   :  { %713 = shalt.err (!%p710_p11)
}
 0x32d   :  { %439 = dma.vmem_to_hbm [thread:$0]  %s437_s29, 128, %s886_s7, [#allocation4]  }
 0x32e   :  { %720 = dma.done.wait [#allocation4], 128  }
 0x32f   :  { %721 = vsyncadd [#allocation4], 4294967168 }
 0x330   :  { %443 = vsyncpa [#allocation3], 1 }
 0x331   :  { %444 = vsyncpa [#allocation6], 1 }
 0x332   :  { %445 = vsyncpa [#allocation9], 1 }
 0x333   :  { %446 = vsyncpa [#allocation4], 1 }

// kernel: tpu_custom_call.1
= control target key start
LH: loop header
LB: loop body
LE: loop exit
PB: predicated region body
PF: predicated region fallthrough
CT: control target
= control target key end

     0   :  { %12 = vsyncpa [#allocation3], 0  ;;  %s879_s0 = inlined_call_operand.hbm [shape: bf16[8,128], index: 0, kind: input, shape index: {}]   ;;  %s880_s1 = inlined_call_operand.hbm [shape: bf16[128,128], index: 1, kind: input, shape index: {}]   ;;  %s881_s2 = inlined_call_operand.vmem [shape: f32[1,128], index: 2, kind: input, shape index: {}]   ;;  %s882_s3 = inlined_call_operand.hbm [shape: bf16[128,128], index: 3, kind: input, shape index: {}]   ;;  %s883_s4 = inlined_call_operand.vmem [shape: f32[1,128], index: 4, kind: input, shape index: {}]   ;;  %s884_s5 = inlined_call_operand.hbm [shape: bf16[128,128], index: 5, kind: input, shape index: {}]   ;;  %s885_s6 = inlined_call_operand.vmem [shape: f32[1,128], index: 6, kind: input, shape index: {}]   ;;  %s886_s7 = inlined_call_operand.hbm [shape: f32[8,128], index: 7, kind: output, shape index: {}]  }
   0x1   :  { %13 = vsyncpa [#allocation6], 0 }
   0x2   :  { %14 = vsyncpa [#allocation9], 0 }
   0x3   :  { %15 = vsyncpa [#allocation4], 0  ;;  %s722_s24 = smov [#allocation5]   ;;  %s604_s28 = scalar_lea.hbm %s880_s1, 1024 }
   0x4   :  { %s31_s25 = sshll.u32 %s722_s24, 4  ;;  %p605_p0 = scmp.ne.s32.totalorder %s880_s1, %s604_s28  ;;  %s32_s25 = int_to_ptr.vmem [resolvable:$true] %s31_s25 }
   0x5   :  { %p608_p1 = scmp.lt.u32.totalorder %s604_s28, %s880_s1 }
   0x7   :  { %p610_p2 = pnand %p608_p1, %p605_p0 }
   0x9   :  { %613 = shalt.err (!%p610_p2)
}
   0xa   :  { %s614_s10 = scalar_lea.vmem %s32_s25, 1024  ;;  %p619_p4 = scmp.lt.s32.totalorder %s32_s25, %s32_s25 }
   0xb   :  { %p615_p3 = scmp.ne.s32.totalorder %s32_s25, %s614_s10  ;;  %p620_p5 = scmp.lt.s32.totalorder %s614_s10, %s614_s10 }
   0xd   :  { %p621_p6 = por %p620_p5, %p619_p4 }
   0xf   :  { %p622_p7 = pnand %p621_p6, %p615_p3 }
  0x11   :  { %625 = shalt.err (!%p622_p7)
}
  0x12   :  { %s723_s11 = smov 64   ;;  %s724_s12 = smov 4  }
  0x13   :  { %37 = dma.hbm_to_vmem [thread:$0]  %s880_s1, 1024, %s32_s25, [#allocation6], %s723_s11, %s723_s11, %s724_s12  }
  0x14   :  { %s725_s15 = smov [#allocation2]   ;;  %s726_s17 = smov [#allocation7]  }
  0x15   :  { %s22_s16 = sshll.u32 %s725_s15, 4  ;;  %s45_s18 = sshll.u32 %s726_s17, 4  ;;  %s23_s16 = int_to_ptr.vmem [resolvable:$true] %s22_s16  ;;  %s46_s18 = int_to_ptr.vmem [resolvable:$true] %s45_s18 }
  0x16   :  { %s626_s21 = scalar_lea.hbm %s879_s0, 64 }
  0x17   :  { %p627_p8 = scmp.ne.s32.totalorder %s879_s0, %s626_s21  ;;  %p630_p9 = scmp.lt.u32.totalorder %s626_s21, %s879_s0 }
  0x19   :  { %p632_p10 = pnand %p630_p9, %p627_p8 }
  0x1b   :  { %635 = shalt.err (!%p632_p10)
}
  0x1c   :  { %s636_s1 = scalar_lea.vmem %s23_s16, 64  ;;  %p641_p12 = scmp.lt.s32.totalorder %s23_s16, %s23_s16 }
  0x1d   :  { %p637_p11 = scmp.ne.s32.totalorder %s23_s16, %s636_s1  ;;  %p642_p13 = scmp.lt.s32.totalorder %s636_s1, %s636_s1 }
  0x1f   :  { %p643_p0 = por %p642_p13, %p641_p12 }
  0x21   :  { %p644_p1 = pnand %p643_p0, %p637_p11 }
  0x23   :  { %647 = shalt.err (!%p644_p1)
}
  0x24   :  { %25 = dma.hbm_to_vmem [thread:$0]  %s879_s0, 64, %s23_s16, [#allocation3]  }
  0x25   :  { %s648_s30 = scalar_lea.hbm %s882_s3, 1024 }
  0x26   :  { %p649_p2 = scmp.ne.s32.totalorder %s882_s3, %s648_s30  ;;  %p652_p3 = scmp.lt.u32.totalorder %s648_s30, %s882_s3 }
  0x28   :  { %p654_p4 = pnand %p652_p3, %p649_p2 }
  0x2a   :  { %657 = shalt.err (!%p654_p4)
}
  0x2b   :  { %s658_s14 = scalar_lea.vmem %s46_s18, 1024  ;;  %p663_p6 = scmp.lt.s32.totalorder %s46_s18, %s46_s18 }
  0x2c   :  { %p659_p5 = scmp.ne.s32.totalorder %s46_s18, %s658_s14  ;;  %p664_p7 = scmp.lt.s32.totalorder %s658_s14, %s658_s14 }
  0x2e   :  { %p665_p8 = por %p664_p7, %p663_p6 }
  0x30   :  { %p666_p9 = pnand %p665_p8, %p659_p5 }
  0x32   :  { %669 = shalt.err (!%p666_p9)
}
  0x33   :  { %51 = dma.hbm_to_vmem [thread:$0]  %s882_s3, 1024, %s46_s18, [#allocation6], %s723_s11, %s723_s11, %s724_s12  }
  0x34   :  { %s727_s16 = smov [#allocation8]   ;;  %s670_s21 = scalar_lea.hbm %s884_s5, 1024 }
  0x35   :  { %s59_s17 = sshll.u32 %s727_s16, 4  ;;  %p671_p10 = scmp.ne.s32.totalorder %s884_s5, %s670_s21  ;;  %s60_s17 = int_to_ptr.vmem [resolvable:$true] %s59_s17 }
  0x36   :  { %p674_p11 = scmp.lt.u32.totalorder %s670_s21, %s884_s5 }
  0x38   :  { %p676_p12 = pnand %p674_p11, %p671_p10 }
  0x3a   :  { %679 = shalt.err (!%p676_p12)
}
  0x3b   :  { %s680_s1 = scalar_lea.vmem %s60_s17, 1024  ;;  %p685_p0 = scmp.lt.s32.totalorder %s60_s17, %s60_s17 }
  0x3c   :  { %p681_p13 = scmp.ne.s32.totalorder %s60_s17, %s680_s1  ;;  %p686_p1 = scmp.lt.s32.totalorder %s680_s1, %s680_s1 }
  0x3e   :  { %p687_p2 = por %p686_p1, %p685_p0 }
  0x40   :  { %p688_p3 = pnand %p687_p2, %p681_p13 }
  0x42   :  { %691 = shalt.err (!%p688_p3)
}
  0x43   :  { %65 = dma.hbm_to_vmem [thread:$0]  %s884_s5, 1024, %s60_s17, [#allocation9], %s723_s11, %s723_s11, %s724_s12  }
  0x44   :  { %714 = dma.done.wait [#allocation3], 64  }
  0x45   :  { %715 = vsyncadd [#allocation3], 4294967232 }
  0x46   :  { %716 = dma.done.wait [#allocation6], 2048  }
  0x47   :  { %717 = vsyncadd [#allocation6], 4294965248 }
  0x48   :  { %718 = dma.done.wait [#allocation9], 1024  }
  0x49   :  { %719 = vsyncadd [#allocation9], 4294966272  ;;  %v728_v0 = vmov 0.0   ;;  %vm729_vm0 = vmmov 0   ;;  %v572_v1 = vld [vmem:[#allocation5] sm:$0xff]   ;;  %v573_v2 = vld [vmem:[#allocation5 + $0x8] sm:$0xff]  }
  0x4a   :  { %503 = vmatprep.subr.bf16.mxu0 %v728_v0  ;;  %519 = vmatprep.mubr.msk.bf16.mxu0 %vm729_vm0, %v728_v0  ;;  %v574_v3 = vld [vmem:[#allocation5 + $0x10] sm:$0xff]   ;;  %v575_v4 = vld [vmem:[#allocation5 + $0x18] sm:$0xff]   ;;  %v576_v5 = vld [vmem:[#allocation5 + $0x20] sm:$0xff]   ;;  %s730_s28 = smov [#allocation10]  }
  0x4b   :  { %523 = vmatprep.subr.bf16.mxu1 %v728_v0  ;;  %539 = vmatprep.mubr.msk.bf16.mxu1 %vm729_vm0, %v728_v0  ;;  %v577_v6 = vld [vmem:[#allocation5 + $0x28] sm:$0xff]   ;;  %v578_v7 = vld [vmem:[#allocation5 + $0x30] sm:$0xff]   ;;  %v579_v8 = vld [vmem:[#allocation5 + $0x38] sm:$0xff]   ;;  %s436_s29 = sshll.u32 %s730_s28, 4  ;;  %s437_s29 = int_to_ptr.vmem [resolvable:$true] %s436_s29 }
  0x4c   :  { %504 = vmatpush3.bf16.msra.mxu0 %v572_v1  ;;  %v81_v9 = vld [vmem:[#allocation2] sm:$0xf]  ;;  %v580_v10 = vld [vmem:[#allocation7] sm:$0xff]   ;;  %v581_v11 = vld [vmem:[#allocation7 + $0x8] sm:$0xff]   ;;  %p697_p5 = scmp.lt.s32.totalorder %s437_s29, %s437_s29 }
  0x4d   :  { %505 = vmatprep.subr.bf16.mxu0 %v728_v0  ;;  %524 = vmatpush3.bf16.msra.mxu1 %v580_v10  ;;  %v582_v12 = vld [vmem:[#allocation7 + $0x10] sm:$0xff]   ;;  %v583_v13 = vld [vmem:[#allocation7 + $0x18] sm:$0xff]   ;;  %v584_v14 = vld [vmem:[#allocation7 + $0x20] sm:$0xff]  }
  0x4e   :  { %525 = vmatprep.subr.bf16.mxu1 %v728_v0  ;;  %v585_v15 = vld [vmem:[#allocation7 + $0x28] sm:$0xff]   ;;  %v586_v16 = vld [vmem:[#allocation7 + $0x30] sm:$0xff]   ;;  %v587_v17 = vld [vmem:[#allocation7 + $0x38] sm:$0xff]  }
  0x4f   :  { %v447_v18 = vld [vmem:[%s881_s2] ss:$0 sm:$0xff]  ;;  %v588_v29 = vld [vmem:[#allocation8] sm:$0xff]   ;;  %v589_v30 = vld [vmem:[#allocation8 + $0x8] sm:$0xff]  }
  0x50   :  { %506 = vmatpush3.bf16.msra.mxu0 %v573_v2  ;;  %v590_v31 = vld [vmem:[#allocation8 + $0x10] sm:$0xff]   ;;  %v591_v32 = vld [vmem:[#allocation8 + $0x18] sm:$0xff]   ;;  %v592_v33 = vld [vmem:[#allocation8 + $0x20] sm:$0xff]  }
  0x51   :  { %507 = vmatprep.subr.bf16.mxu0 %v728_v0  ;;  %526 = vmatpush3.bf16.msra.mxu1 %v581_v11  ;;  %v593_v34 = vld [vmem:[#allocation8 + $0x28] sm:$0xff]   ;;  %v594_v35 = vld [vmem:[#allocation8 + $0x30] sm:$0xff]   ;;  %v595_v36 = vld [vmem:[#allocation8 + $0x38] sm:$0xff]  }
  0x52   :  { %527 = vmatprep.subr.bf16.mxu1 %v728_v0  ;;  %v457_v37 = vld [vmem:[%s883_s4] ss:$0 sm:$0xff]  ;;  %s692_s4 = scalar_lea.vmem %s437_s29, 128 }
  0x53   :  { %v467_v48 = vld [vmem:[%s885_s6] ss:$0 sm:$0xff]  ;;  %p693_p4 = scmp.ne.s32.totalorder %s437_s29, %s692_s4  ;;  %p698_p6 = scmp.lt.s32.totalorder %s692_s4, %s692_s4 }
  0x54   :  { %508 = vmatpush3.bf16.msra.mxu0 %v574_v3 }
  0x55   :  { %509 = vmatprep.subr.bf16.mxu0 %v728_v0  ;;  %528 = vmatpush3.bf16.msra.mxu1 %v582_v12  ;;  %p699_p7 = por %p698_p6, %p697_p5 }
  0x56   :  { %529 = vmatprep.subr.bf16.mxu1 %v728_v0 }
  0x57   :  { %p700_p8 = pnand %p699_p7, %p693_p4 }
  0x58   :  { %510 = vmatpush3.bf16.msra.mxu0 %v575_v4 }
  0x59   :  { %511 = vmatprep.subr.bf16.mxu0 %v728_v0  ;;  %530 = vmatpush3.bf16.msra.mxu1 %v583_v13 }
  0x5a   :  { %531 = vmatprep.subr.bf16.mxu1 %v728_v0 }
  0x5c   :  { %512 = vmatpush3.bf16.msra.mxu0 %v576_v5 }
  0x5d   :  { %513 = vmatprep.subr.bf16.mxu0 %v728_v0  ;;  %532 = vmatpush3.bf16.msra.mxu1 %v584_v14 }
  0x5e   :  { %533 = vmatprep.subr.bf16.mxu1 %v728_v0 }
  0x60   :  { %514 = vmatpush3.bf16.msra.mxu0 %v577_v6 }
  0x61   :  { %515 = vmatprep.subr.bf16.mxu0 %v728_v0  ;;  %534 = vmatpush3.bf16.msra.mxu1 %v585_v15 }
  0x62   :  { %535 = vmatprep.subr.bf16.mxu1 %v728_v0 }
  0x64   :  { %516 = vmatpush3.bf16.msra.mxu0 %v578_v7 }
  0x65   :  { %517 = vmatprep.subr.bf16.mxu0 %v728_v0  ;;  %536 = vmatpush3.bf16.msra.mxu1 %v586_v16 }
  0x66   :  { %537 = vmatprep.subr.bf16.mxu1 %v728_v0 }
  0x68   :  { %518 = vmatpush3.bf16.msra.mxu0 %v579_v8 }
  0x69   :  { %543 = vmatprep.subr.bf16.mxu0 %v728_v0  ;;  %538 = vmatpush3.bf16.msra.mxu1 %v587_v17 }
  0x6b   :  { %520 = vmatmul.mubr.bf16.vlgmr.msra.gmra.mrb[0].mxu0 %v81_v9 }
  0x6c   :  { %559 = vmatprep.mubr.msk.bf16.mxu0 %vm729_vm0, %v728_v0  ;;  %544 = vmatpush3.bf16.msra.mxu0 %v588_v29 }
  0x6d   :  { %545 = vmatprep.subr.bf16.mxu0 %v728_v0 }
  0x70   :  { %546 = vmatpush3.bf16.msra.mxu0 %v589_v30 }
  0x71   :  { %547 = vmatprep.subr.bf16.mxu0 %v728_v0 }
  0x74   :  { %548 = vmatpush3.bf16.msra.mxu0 %v590_v31 }
  0x75   :  { %549 = vmatprep.subr.bf16.mxu0 %v728_v0 }
  0x78   :  { %550 = vmatpush3.bf16.msra.mxu0 %v591_v32 }
  0x79   :  { %551 = vmatprep.subr.bf16.mxu0 %v728_v0 }
  0x7c   :  { %552 = vmatpush3.bf16.msra.mxu0 %v592_v33 }
  0x7d   :  { %553 = vmatprep.subr.bf16.mxu0 %v728_v0 }
  0x80   :  { %554 = vmatpush3.bf16.msra.mxu0 %v593_v34 }
  0x81   :  { %555 = vmatprep.subr.bf16.mxu0 %v728_v0 }
  0x84   :  { %556 = vmatpush3.bf16.msra.mxu0 %v594_v35 }
  0x85   :  { %557 = vmatprep.subr.bf16.mxu0 %v728_v0 }
  0x88   :  { %558 = vmatpush3.bf16.msra.mxu0 %v595_v36 }
 0x13e   :  { %v187_v19 = vpop.f32.mrb[0].mxu0 }
 0x13f   :  { %v188_v20 = vadd.f32 %v447_v18, %v187_v19  ;;  %v521_v21 = vpop.f32.mrb[1].mxu0 }
 0x140   :  { %v190_v22 = vpop.f32.mrb[2].mxu0 }
 0x141   :  { %v456_v23 = vmul.f32 -1.442695, %v188_v20  ;;  %v522_v24 = vpop.f32.mrb[3].mxu0 }
 0x143   :  { %596 = vpow2.f32 %v456_v23 }
 0x14d   :  { %v597_v25 = vpop.eup %596 }
 0x14e   :  { %v196_v26 = vadd.f32 1.0, %v597_v25 }
 0x150   :  { %598 = vrcp.f32 %v196_v26 }
 0x15a   :  { %v599_v27 = vpop.eup %598 }
 0x15b   :  { %v199_v28 = vpack.c.bf16 %v599_v27, %v599_v27 }
 0x15d   :  { %540 = vmatmul.mubr.bf16.vlgmr.msra.gmra.mrb[0].mxu1 %v199_v28 }
 0x230   :  { %v305_v38 = vpop.f32.mrb[0].mxu1 }
 0x231   :  { %v306_v39 = vadd.f32 %v457_v37, %v305_v38  ;;  %v541_v40 = vpop.f32.mrb[1].mxu1 }
 0x232   :  { %v308_v41 = vpop.f32.mrb[2].mxu1 }
 0x233   :  { %v466_v42 = vmul.f32 -1.442695, %v306_v39  ;;  %v542_v43 = vpop.f32.mrb[3].mxu1 }
 0x235   :  { %600 = vpow2.f32 %v466_v42 }
 0x23f   :  { %v601_v44 = vpop.eup %600 }
 0x240   :  { %v314_v45 = vadd.f32 1.0, %v601_v44 }
 0x242   :  { %602 = vrcp.f32 %v314_v45 }
 0x24c   :  { %v603_v46 = vpop.eup %602 }
 0x24d   :  { %v317_v47 = vpack.c.bf16 %v603_v46, %v603_v46 }
 0x24f   :  { %560 = vmatmul.mubr.bf16.vlgmr.msra.gmra.mrb[4].mxu0 %v317_v47 }
 0x322   :  { %v423_v49 = vpop.f32.mrb[4].mxu0 }
 0x323   :  { %v424_v50 = vadd.f32 %v467_v48, %v423_v49  ;;  %v561_v51 = vpop.f32.mrb[5].mxu0 }
 0x324   :  { %v426_v52 = vpop.f32.mrb[6].mxu0 }
 0x325   :  { %429 = vst [vmem:[#allocation10] sm:$0xff] %v424_v50  ;;  %v562_v53 = vpop.f32.mrb[7].mxu0 }
 0x326   :  { %703 = shalt.err (!%p700_p8)
}
 0x327   :  { %s704_s6 = scalar_lea.hbm %s886_s7, 128 }
 0x328   :  { %p705_p9 = scmp.ne.s32.totalorder %s886_s7, %s704_s6  ;;  %p708_p10 = scmp.lt.u32.totalorder %s704_s6, %s886_s7 }
 0x32a   :  { %p710_p11 = pnand %p708_p10, %p705_p9 }
 0x32c   :  { %713 = shalt.err (!%p710_p11)
}
 0x32d   :  { %439 = dma.vmem_to_hbm [thread:$0]  %s437_s29, 128, %s886_s7, [#allocation4]  }
 0x32e   :  { %720 = dma.done.wait [#allocation4], 128  }
 0x32f   :  { %721 = vsyncadd [#allocation4], 4294967168 }
 0x330   :  { %443 = vsyncpa [#allocation3], 1 }
 0x331   :  { %444 = vsyncpa [#allocation6], 1 }
 0x332   :  { %445 = vsyncpa [#allocation9], 1 }
 0x333   :  { %446 = vsyncpa [#allocation4], 1 }

</bundles_post_ra>
